<compile_context>
chip_gen: v6e
topology: v6e:2x2x1
jax: 0.10.0
libtpu: 0.0.40
codegen_flags: <defaults>
</compile_context>

<pallas_src>
import functools

import jax
import jax.numpy as jnp
from jax.experimental import pallas as pl
from jax.experimental.pallas import tpu as pltpu

B_TILE = 8          # batch rows per grid step (sublane-aligned)
OUT_PAD = 128       # padded output width (real logits are the first 2 columns)
NEG_INF = -1e30


def _round_up(x, m):
    return (x + m - 1) // m * m


# ---------------------------------------------------------------------------
# Fused kernel: conv (im2col matmul) + mask + maxpool + bias/ReLU + highway + head.
# ---------------------------------------------------------------------------
def _fused_disc_kernel(emb_ref, w_ref, cb_ref, mask_ref,
                       hw_w_ref, hw_b_ref, out_w_ref, out_b_ref,
                       pred_ref, *, f_max, l_pad):
    # emb_ref  : [B_TILE, S_pad, E]   bf16   (zero-padded along seq)
    # w_ref    : [f_max*E, N_pad]     bf16   (packed conv weights, all branches)
    # cb_ref   : [1, N_pad]           f32    (conv bias, padded channels = 0)
    # mask_ref : [L_pad, N_pad]       f32    (0 where position valid, -1e30 otherwise)
    # hw_w_ref : [N_pad, N_pad]       bf16   highway weight (pre-transposed, zero-padded)
    # hw_b_ref : [1, N_pad]           f32
    # out_w_ref: [N_pad, OUT_PAD]     bf16   feature2out weight (pre-transposed, zero-padded)
    # out_b_ref: [1, OUT_PAD]         f32
    # pred_ref : [B_TILE, OUT_PAD]    f32
    bt, _, e = emb_ref.shape
    n_pad = w_ref.shape[1]

    emb = emb_ref[...]
    # im2col: stack the f_max shifted windows along lanes -> one lane-dense matmul.
    windows = jnp.concatenate(
        [emb[:, df:df + l_pad, :] for df in range(f_max)], axis=-1)   # [Bt, L_pad, f_max*E]
    windows = windows.reshape(bt * l_pad, f_max * e)                  # sublane-aligned merge

    acc = jnp.dot(windows, w_ref[...],
                  preferred_element_type=jnp.float32)                 # [Bt*L_pad, N_pad] f32
    acc = acc.reshape(bt, l_pad, n_pad)

    # Mask positions past each branch's own conv length, then max over length.
    pooled = jnp.max(acc + mask_ref[...][None, :, :], axis=1)         # [Bt, N_pad]
    # Bias + ReLU hoisted past the max (equivalent: both monotone, bias constant over L).
    feat = jnp.maximum(pooled + cb_ref[...], 0.0)                     # [Bt, N_pad] f32

    # Highway layer.
    h = jnp.dot(feat.astype(jnp.bfloat16), hw_w_ref[...],
                preferred_element_type=jnp.float32) + hw_b_ref[...]
    s = jax.nn.sigmoid(h)
    highway = s * jnp.maximum(h, 0.0) + (1.0 - s) * feat

    # dropout(p=0.2) is identity in inference mode.
    # TODO(synk): training-mode dropout (pltpu.prng_seed/prng_random_bits) not implemented.
    pred_ref[...] = jnp.dot(highway.astype(jnp.bfloat16), out_w_ref[...],
                            preferred_element_type=jnp.float32) + out_b_ref[...]


def fused_forward(emb_pad, packed):
    bp, s_pad, e = emb_pad.shape
    f_max = packed["f_max"]
    l_pad = packed["l_pad"]
    n_pad = packed["w_packed"].shape[1]

    kernel = functools.partial(_fused_disc_kernel, f_max=f_max, l_pad=l_pad)

    flops = (2 * bp * l_pad * (f_max * e) * n_pad     # conv im2col matmul
             + 2 * bp * n_pad * n_pad                 # highway matmul
             + 2 * bp * n_pad * OUT_PAD)              # output matmul
    bytes_accessed = (emb_pad.size * 2
                      + (packed["w_packed"].size + packed["hw_w"].size
                         + packed["out_w"].size) * 2
                      + (packed["conv_b"].size + packed["mask"].size
                         + packed["hw_b"].size + packed["out_b"].size) * 4
                      + bp * OUT_PAD * 4)

    return pl.pallas_call(
        kernel,
        out_shape=jax.ShapeDtypeStruct((bp, OUT_PAD), jnp.float32),
        grid=(bp // B_TILE,),
        in_specs=[
            pl.BlockSpec((B_TILE, s_pad, e), lambda i: (i, 0, 0)),
            pl.BlockSpec(packed["w_packed"].shape, lambda i: (0, 0)),
            pl.BlockSpec(packed["conv_b"].shape, lambda i: (0, 0)),
            pl.BlockSpec(packed["mask"].shape, lambda i: (0, 0)),
            pl.BlockSpec(packed["hw_w"].shape, lambda i: (0, 0)),
            pl.BlockSpec(packed["hw_b"].shape, lambda i: (0, 0)),
            pl.BlockSpec(packed["out_w"].shape, lambda i: (0, 0)),
            pl.BlockSpec(packed["out_b"].shape, lambda i: (0, 0)),
        ],
        out_specs=pl.BlockSpec((B_TILE, OUT_PAD), lambda i: (i, 0)),
        compiler_params=pltpu.CompilerParams(
            dimension_semantics=("parallel",)),
        cost_estimate=pl.CostEstimate(
            flops=int(flops),
            transcendentals=int(bp * n_pad),
            bytes_accessed=int(bytes_accessed)),
    )(emb_pad, packed["w_packed"], packed["conv_b"], packed["mask"],
      packed["hw_w"], packed["hw_b"], packed["out_w"], packed["out_b"])


# ---------------------------------------------------------------------------
# Parameter construction (uniform(-0.05, 0.05) == cfg.dis_init) + one-time packing.
# ---------------------------------------------------------------------------
def init_params(key, vocab_size, embed_dim, filter_sizes, num_filters):
    feature_dim = sum(num_filters)
    keys = iter(jax.random.split(key, 1 + 2 * len(filter_sizes) + 4))
    u = lambda k, shape: jax.random.uniform(k, shape, jnp.float32, -0.05, 0.05)

    params = {"emb_table": u(next(keys), (vocab_size, embed_dim)), "convs": []}
    for f, n in zip(filter_sizes, num_filters):
        w = u(next(keys), (n, 1, f, embed_dim))        # torch Conv2d weight layout
        b = u(next(keys), (n,))
        params["convs"].append((f, w, b))
    params["hw_w"] = u(next(keys), (feature_dim, feature_dim))   # torch Linear [out, in]
    params["hw_b"] = u(next(keys), (feature_dim,))
    params["out_w"] = u(next(keys), (2, feature_dim))
    params["out_b"] = u(next(keys), (2,))
    return params


def prepare_packed(params, seq_len):
    """One-time layout packing: done at init, NOT per forward call."""
    convs = params["convs"]
    filter_sizes = [f for f, _, _ in convs]
    f_max, f_min = max(filter_sizes), min(filter_sizes)
    e = params["emb_table"].shape[1]
    l_valid = seq_len - f_min + 1                 # longest conv output length
    l_pad = _round_up(l_valid, 8)                 # sublane-aligned length
    s_pad = l_pad + f_max - 1                     # padded sequence length

    n_total = sum(w.shape[0] for _, w, _ in convs)
    n_pad = max(_round_up(n_total, 128), 128)

    w_packed = jnp.zeros((f_max, e, n_pad), jnp.float32)
    conv_b = jnp.zeros((1, n_pad), jnp.float32)
    mask = jnp.zeros((l_pad, n_pad), jnp.float32)
    mask = mask.at[l_valid:, :].set(NEG_INF)      # positions past the longest conv length
    col = 0
    for f, w, b in convs:
        n = w.shape[0]
        w_fen = jnp.transpose(w[:, 0], (1, 2, 0))            # [f, E, n]
        w_packed = w_packed.at[:f, :, col:col + n].set(w_fen)
        conv_b = conv_b.at[0, col:col + n].set(b)
        l_f = seq_len - f + 1                                 # this branch's conv length
        if l_f < l_pad:
            mask = mask.at[l_f:, col:col + n].set(NEG_INF)
        col += n
    w_packed = w_packed.reshape(f_max * e, n_pad).astype(jnp.bfloat16)

    fdim = n_total
    hw_w = jnp.zeros((n_pad, n_pad), jnp.float32).at[:fdim, :fdim].set(params["hw_w"].T)
    hw_b = jnp.zeros((1, n_pad), jnp.float32).at[0, :fdim].set(params["hw_b"])
    out_w = jnp.zeros((n_pad, OUT_PAD), jnp.float32).at[:fdim, :2].set(params["out_w"].T)
    out_b = jnp.zeros((1, OUT_PAD), jnp.float32).at[0, :2].set(params["out_b"])

    return {
        "emb_table": params["emb_table"].astype(jnp.bfloat16),
        "seq_len": seq_len, "s_pad": s_pad, "l_pad": l_pad,
        "f_max": f_max, "f_min": f_min,
        "w_packed": w_packed, "conv_b": conv_b, "mask": mask,
        "hw_w": hw_w.astype(jnp.bfloat16), "hw_b": hw_b,
        "out_w": out_w.astype(jnp.bfloat16), "out_b": out_b,
    }


# ---------------------------------------------------------------------------
# Forward pass (embedding gather + padding are glue; everything else is one kernel).
# ---------------------------------------------------------------------------
def cnn_discriminator_forward(packed, inp):
    # inp: [B, S] int32 token ids
    b, s = inp.shape
    assert s == packed["seq_len"]
    emb = jnp.take(packed["emb_table"], inp, axis=0)          # [B, S, E] bf16 (glue)
    b_pad = max(_round_up(b, B_TILE), B_TILE)
    emb_pad = jnp.pad(emb, ((0, b_pad - b), (0, packed["s_pad"] - s), (0, 0)))
    pred_pad = fused_forward(emb_pad, packed)                 # [B_pad, OUT_PAD] f32
    return pred_pad[:b, :2]


if __name__ == "__main__":
    key = jax.random.PRNGKey(0)
    k_inp, k_params = jax.random.split(key)

    # Small shapes consistent with the module.
    batch, seq_len = 2, 8
    vocab_size, embed_dim = 20, 32
    filter_sizes = [2, 3]
    num_filters = [8, 16]

    params = init_params(k_params, vocab_size, embed_dim, filter_sizes, num_filters)
    packed = prepare_packed(params, seq_len)
    inp = jax.random.randint(k_inp, (batch, seq_len), 0, vocab_size, dtype=jnp.int32)

    pred = cnn_discriminator_forward(packed, inp)
    pred = jax.block_until_ready(pred)
    assert pred.shape == (batch, 2) and pred.dtype == jnp.float32
    assert bool(jnp.all(jnp.isfinite(pred)))
    print("KERNEL_OK")
</pallas_src>

<mosaic_0001>
module attributes {stable_mosaic.version = 11 : i64} {
  func.func @_fused_disc_kernel(%arg0: i32, %arg1: memref<8x10x32xbf16, #tpu.memory_space<vmem>>, %arg2: memref<96x128xbf16, #tpu.memory_space<vmem>>, %arg3: memref<1x128xf32, #tpu.memory_space<vmem>>, %arg4: memref<8x128xf32, #tpu.memory_space<vmem>>, %arg5: memref<128x128xbf16, #tpu.memory_space<vmem>>, %arg6: memref<1x128xf32, #tpu.memory_space<vmem>>, %arg7: memref<128x128xbf16, #tpu.memory_space<vmem>>, %arg8: memref<1x128xf32, #tpu.memory_space<vmem>>, %arg9: memref<8x128xf32, #tpu.memory_space<vmem>>) attributes {dimension_semantics = [#tpu.dimension_semantics<parallel>], iteration_bounds = array<i64: 1>, scalar_prefetch = 0 : i64, scratch_operands = 0 : i64, tpu.core_type = #tpu.core_type<tc>, window_params = [{transform_indices = @transform_0, window_bounds = array<i64: 8, 10, 32>}, {pipeline_mode = #tpu.pipeline_mode<synchronous>, transform_indices = @transform_1, window_bounds = array<i64: 96, 128>}, {pipeline_mode = #tpu.pipeline_mode<synchronous>, transform_indices = @transform_2, window_bounds = array<i64: 1, 128>}, {pipeline_mode = #tpu.pipeline_mode<synchronous>, transform_indices = @transform_3, window_bounds = array<i64: 8, 128>}, {pipeline_mode = #tpu.pipeline_mode<synchronous>, transform_indices = @transform_4, window_bounds = array<i64: 128, 128>}, {pipeline_mode = #tpu.pipeline_mode<synchronous>, transform_indices = @transform_5, window_bounds = array<i64: 1, 128>}, {pipeline_mode = #tpu.pipeline_mode<synchronous>, transform_indices = @transform_6, window_bounds = array<i64: 128, 128>}, {pipeline_mode = #tpu.pipeline_mode<synchronous>, transform_indices = @transform_7, window_bounds = array<i64: 1, 128>}, {transform_indices = @transform_8, window_bounds = array<i64: 8, 128>}]} {
    %c0 = arith.constant 0 : index
    %c0_0 = arith.constant 0 : index
    %c0_1 = arith.constant 0 : index
    %0 = vector.load %arg1[%c0, %c0_0, %c0_1] : memref<8x10x32xbf16, #tpu.memory_space<vmem>>, vector<8x10x32xbf16>
    %1 = vector.extract_strided_slice %0 {offsets = [0, 0, 0], sizes = [8, 8, 32], strides = [1, 1, 1]} : vector<8x10x32xbf16> to vector<8x8x32xbf16>
    %2 = vector.extract_strided_slice %0 {offsets = [0, 1, 0], sizes = [8, 8, 32], strides = [1, 1, 1]} : vector<8x10x32xbf16> to vector<8x8x32xbf16>
    %3 = vector.extract_strided_slice %0 {offsets = [0, 2, 0], sizes = [8, 8, 32], strides = [1, 1, 1]} : vector<8x10x32xbf16> to vector<8x8x32xbf16>
    %4 = tpu.concatenate %1, %2, %3 in 2 : vector<8x8x32xbf16>, vector<8x8x32xbf16>, vector<8x8x32xbf16> -> vector<8x8x96xbf16>
    %5 = vector.shape_cast %4 : vector<8x8x96xbf16> to vector<64x96xbf16>
    %c0_2 = arith.constant 0 : index
    %c0_3 = arith.constant 0 : index
    %6 = vector.load %arg2[%c0_2, %c0_3] : memref<96x128xbf16, #tpu.memory_space<vmem>>, vector<96x128xbf16>
    %cst = arith.constant dense<0.000000e+00> : vector<64x128xf32>
    %7 = tpu.matmul %5, %6, %cst {dimension_numbers = #tpu.dot_dimension_numbers<[1], [0], [0], [1], [0, 0, 1, 1], [], []>} : vector<64x96xbf16>, vector<96x128xbf16>, vector<64x128xf32> -> vector<64x128xf32>
    %8 = vector.shape_cast %7 : vector<64x128xf32> to vector<8x8x128xf32>
    %c0_4 = arith.constant 0 : index
    %c0_5 = arith.constant 0 : index
    %9 = vector.load %arg4[%c0_4, %c0_5] : memref<8x128xf32, #tpu.memory_space<vmem>>, vector<8x128xf32>
    %10 = vector.shape_cast %9 : vector<8x128xf32> to vector<1x8x128xf32>
    %11 = vector.broadcast %10 : vector<1x8x128xf32> to vector<8x8x128xf32>
    %12 = arith.addf %8, %11 : vector<8x8x128xf32>
    %cst_6 = arith.constant dense<0xFF800000> : vector<8x128xf32>
    %13 = vector.multi_reduction <maximumf>, %12, %cst_6 [1] : vector<8x8x128xf32> to vector<8x128xf32>
    %c0_7 = arith.constant 0 : index
    %c0_8 = arith.constant 0 : index
    %14 = vector.load %arg3[%c0_7, %c0_8] : memref<1x128xf32, #tpu.memory_space<vmem>>, vector<1x128xf32>
    %15 = vector.broadcast %14 : vector<1x128xf32> to vector<8x128xf32>
    %16 = arith.addf %13, %15 : vector<8x128xf32>
    %cst_9 = arith.constant 0.000000e+00 : f32
    %17 = vector.broadcast %cst_9 : f32 to vector<8x128xf32>
    %18 = arith.maximumf %16, %17 : vector<8x128xf32>
    %19 = arith.truncf %18 : vector<8x128xf32> to vector<8x128xbf16>
    %c0_10 = arith.constant 0 : index
    %c0_11 = arith.constant 0 : index
    %20 = vector.load %arg5[%c0_10, %c0_11] : memref<128x128xbf16, #tpu.memory_space<vmem>>, vector<128x128xbf16>
    %cst_12 = arith.constant dense<0.000000e+00> : vector<8x128xf32>
    %21 = tpu.matmul %19, %20, %cst_12 {dimension_numbers = #tpu.dot_dimension_numbers<[1], [0], [0], [1], [0, 0, 1, 1], [], []>} : vector<8x128xbf16>, vector<128x128xbf16>, vector<8x128xf32> -> vector<8x128xf32>
    %c0_13 = arith.constant 0 : index
    %c0_14 = arith.constant 0 : index
    %22 = vector.load %arg6[%c0_13, %c0_14] : memref<1x128xf32, #tpu.memory_space<vmem>>, vector<1x128xf32>
    %23 = vector.broadcast %22 : vector<1x128xf32> to vector<8x128xf32>
    %24 = arith.addf %21, %23 : vector<8x128xf32>
    %25 = arith.negf %24 : vector<8x128xf32>
    %26 = math.exp %25 : vector<8x128xf32>
    %cst_15 = arith.constant 1.000000e+00 : f32
    %27 = vector.broadcast %cst_15 : f32 to vector<8x128xf32>
    %28 = arith.addf %27, %26 : vector<8x128xf32>
    %29 = arith.divf %27, %28 : vector<8x128xf32>
    %cst_16 = arith.constant 0.000000e+00 : f32
    %30 = vector.broadcast %cst_16 : f32 to vector<8x128xf32>
    %31 = arith.maximumf %24, %30 : vector<8x128xf32>
    %32 = arith.mulf %29, %31 : vector<8x128xf32>
    %cst_17 = arith.constant 1.000000e+00 : f32
    %33 = vector.broadcast %cst_17 : f32 to vector<8x128xf32>
    %34 = arith.subf %33, %29 : vector<8x128xf32>
    %35 = arith.mulf %34, %18 : vector<8x128xf32>
    %36 = arith.addf %32, %35 : vector<8x128xf32>
    %37 = arith.truncf %36 : vector<8x128xf32> to vector<8x128xbf16>
    %c0_18 = arith.constant 0 : index
    %c0_19 = arith.constant 0 : index
    %38 = vector.load %arg7[%c0_18, %c0_19] : memref<128x128xbf16, #tpu.memory_space<vmem>>, vector<128x128xbf16>
    %cst_20 = arith.constant dense<0.000000e+00> : vector<8x128xf32>
    %39 = tpu.matmul %37, %38, %cst_20 {dimension_numbers = #tpu.dot_dimension_numbers<[1], [0], [0], [1], [0, 0, 1, 1], [], []>} : vector<8x128xbf16>, vector<128x128xbf16>, vector<8x128xf32> -> vector<8x128xf32>
    %c0_21 = arith.constant 0 : index
    %c0_22 = arith.constant 0 : index
    %40 = vector.load %arg8[%c0_21, %c0_22] : memref<1x128xf32, #tpu.memory_space<vmem>>, vector<1x128xf32>
    %41 = vector.broadcast %40 : vector<1x128xf32> to vector<8x128xf32>
    %42 = arith.addf %39, %41 : vector<8x128xf32>
    %c0_23 = arith.constant 0 : index
    %c0_24 = arith.constant 0 : index
    %43 = vector.load %arg9[%c0_23, %c0_24] : memref<8x128xf32, #tpu.memory_space<vmem>>, vector<8x128xf32>
    tpu.vector_store %arg9[%c0_23, %c0_24], %42 {strides = array<i32>} : memref<8x128xf32, #tpu.memory_space<vmem>>, vector<8x128xf32>,
    return
  }
  func.func @transform_0(%arg0: i32) -> (i32, i32, i32) {
    %c0_i32 = arith.constant 0 : i32
    %c0_i32_0 = arith.constant 0 : i32
    %c0_i32_1 = arith.constant 0 : i32
    return %arg0, %c0_i32, %c0_i32_0 : i32, i32, i32
  }
  func.func @transform_1(%arg0: i32) -> (i32, i32) {
    %c0_i32 = arith.constant 0 : i32
    %c0_i32_0 = arith.constant 0 : i32
    %c0_i32_1 = arith.constant 0 : i32
    return %c0_i32, %c0_i32_0 : i32, i32
  }
  func.func @transform_2(%arg0: i32) -> (i32, i32) {
    %c0_i32 = arith.constant 0 : i32
    %c0_i32_0 = arith.constant 0 : i32
    %c0_i32_1 = arith.constant 0 : i32
    return %c0_i32, %c0_i32_0 : i32, i32
  }
  func.func @transform_3(%arg0: i32) -> (i32, i32) {
    %c0_i32 = arith.constant 0 : i32
    %c0_i32_0 = arith.constant 0 : i32
    %c0_i32_1 = arith.constant 0 : i32
    return %c0_i32, %c0_i32_0 : i32, i32
  }
  func.func @transform_4(%arg0: i32) -> (i32, i32) {
    %c0_i32 = arith.constant 0 : i32
    %c0_i32_0 = arith.constant 0 : i32
    %c0_i32_1 = arith.constant 0 : i32
    return %c0_i32, %c0_i32_0 : i32, i32
  }
  func.func @transform_5(%arg0: i32) -> (i32, i32) {
    %c0_i32 = arith.constant 0 : i32
    %c0_i32_0 = arith.constant 0 : i32
    %c0_i32_1 = arith.constant 0 : i32
    return %c0_i32, %c0_i32_0 : i32, i32
  }
  func.func @transform_6(%arg0: i32) -> (i32, i32) {
    %c0_i32 = arith.constant 0 : i32
    %c0_i32_0 = arith.constant 0 : i32
    %c0_i32_1 = arith.constant 0 : i32
    return %c0_i32, %c0_i32_0 : i32, i32
  }
  func.func @transform_7(%arg0: i32) -> (i32, i32) {
    %c0_i32 = arith.constant 0 : i32
    %c0_i32_0 = arith.constant 0 : i32
    %c0_i32_1 = arith.constant 0 : i32
    return %c0_i32, %c0_i32_0 : i32, i32
  }
  func.func @transform_8(%arg0: i32) -> (i32, i32) {
    %c0_i32 = arith.constant 0 : i32
    %c0_i32_0 = arith.constant 0 : i32
    return %arg0, %c0_i32 : i32, i32
  }
}

</mosaic_0001>

<bundles_post_ra>
// kernel: tpu_custom_call.1
= control target key start
LH: loop header
LB: loop body
LE: loop exit
PB: predicated region body
PF: predicated region fallthrough
CT: control target
= control target key end

     0   :  { %13 = vsyncpa [#allocation3], 0  ;;  %s1295_s0 = inlined_call_operand.vmem [shape: bf16[8,10,32], index: 0, kind: input, shape index: {}]   ;;  %s1296_s1 = inlined_call_operand.hbm [shape: bf16[96,128], index: 1, kind: input, shape index: {}]   ;;  %s1297_s2 = inlined_call_operand.vmem [shape: f32[1,128], index: 2, kind: input, shape index: {}]   ;;  %s1298_s3 = inlined_call_operand.vmem [shape: f32[8,128], index: 3, kind: input, shape index: {}]   ;;  %s1299_s4 = inlined_call_operand.vmem [shape: bf16[128,128], index: 4, kind: input, shape index: {}]   ;;  %s1300_s5 = inlined_call_operand.vmem [shape: f32[1,128], index: 5, kind: input, shape index: {}]   ;;  %s1301_s6 = inlined_call_operand.hbm [shape: bf16[128,128], index: 6, kind: input, shape index: {}]   ;;  %s1302_s7 = inlined_call_operand.vmem [shape: f32[1,128], index: 7, kind: input, shape index: {}]   ;;  %s1303_s8 = inlined_call_operand.hbm [shape: f32[8,128], index: 8, kind: output, shape index: {}]  }
   0x1   :  { %14 = vsyncpa [#allocation6], 0 }
   0x2   :  { %15 = vsyncpa [#allocation4], 0  ;;  %s1038_s27 = smov [#allocation2]  }
   0x3   :  { %s23_s28 = sshll.u32 %s1038_s27, 4  ;;  %s24_s28 = int_to_ptr.vmem [resolvable:$true] %s23_s28 }
   0x4   :  { %s980_s29 = scalar_lea.vmem %s24_s28, 768  ;;  %p985_p1 = scmp.lt.s32.totalorder %s24_s28, %s24_s28 }
   0x5   :  { %p981_p0 = scmp.ne.s32.totalorder %s24_s28, %s980_s29  ;;  %p986_p2 = scmp.lt.s32.totalorder %s980_s29, %s980_s29 }
   0x7   :  { %p987_p3 = por %p986_p2, %p985_p1 }
   0x9   :  { %p988_p4 = pnand %p987_p3, %p981_p0 }
   0xb   :  { %991 = shalt.err (!%p988_p4)
}
   0xc   :  { %s1039_s30 = smov 64   ;;  %s1040_s9 = smov 4  }
   0xd   :  { %29 = dma.hbm_to_vmem [thread:$0]  %s1296_s1, 768, %s24_s28, [#allocation3], %s1039_s30, %s1039_s30, %s1040_s9  }
   0xe   :  { %s1041_s12 = smov [#allocation5]  }
   0xf   :  { %s43_s13 = sshll.u32 %s1041_s12, 4  ;;  %s44_s13 = int_to_ptr.vmem [resolvable:$true] %s43_s13 }
  0x10   :  { %s1000_s14 = scalar_lea.vmem %s44_s13, 1024  ;;  %p1005_p6 = scmp.lt.s32.totalorder %s44_s13, %s44_s13 }
  0x11   :  { %p1001_p5 = scmp.ne.s32.totalorder %s44_s13, %s1000_s14  ;;  %p1006_p7 = scmp.lt.s32.totalorder %s1000_s14, %s1000_s14 }
  0x13   :  { %p1007_p8 = por %p1006_p7, %p1005_p6 }
  0x15   :  { %p1008_p9 = pnand %p1007_p8, %p1001_p5 }
  0x17   :  { %1011 = shalt.err (!%p1008_p9)
}
  0x18   :  { %49 = dma.hbm_to_vmem [thread:$0]  %s1301_s6, 1024, %s44_s13, [#allocation6], %s1039_s30, %s1039_s30, %s1040_s9  }
  0x19   :  { %1032 = dma.done.wait [#allocation3], 768  }
  0x1a   :  { %1033 = vsyncadd [#allocation3], 4294966528 }
  0x1b   :  { %1034 = dma.done.wait [#allocation6], 1024  }
  0x1c   :  { %1035 = vsyncadd [#allocation6], 4294966272  ;;  %v1104_v0 = vld [vmem:[%s1295_s0 + $0x8] sm:$0xf]  ;;  %v62_v1 = vld [vmem:[%s1295_s0 + $0xc] sm:$0x1] }
  0x1d   :  { %v1112_v2 = vld [vmem:[%s1295_s0] sm:$0xf]  ;;  %v1115_v3 = vcombine.low %v1104_v0, %v62_v1  ;;  %v60_v4 = vld [vmem:[%s1295_s0 + $0x4] sm:$0x1]  ;;  %v1123_v5 = vld [vmem:[%s1295_s0 + $0x18] sm:$0xf] }
  0x1e   :  { %v66_v6 = vld [vmem:[%s1295_s0 + $0x1c] sm:$0x1]  ;;  %v800_v7 = vcombine.low %v1112_v2, %v60_v4  ;;  %v1133_v9 = vld [vmem:[%s1295_s0 + $0x10] sm:$0xf]  ;;  %v64_v10 = vld [vmem:[%s1295_s0 + $0x14] sm:$0x1] }
  0x1f   :  { %v803_v8 = vcombine.low %v1123_v5, %v66_v6  ;;  %v188_v11 = vrot.slane %v1115_v3, 1  ;;  %v802_v12 = vcombine.low %v1133_v9, %v64_v10  ;;  %v1143_v13 = vld [vmem:[%s1295_s0 + $0x28] sm:$0xf]  ;;  %v70_v14 = vld [vmem:[%s1295_s0 + $0x2c] sm:$0x1]  ;;  %v125_v18 = vshll.u32 %v1115_v3, 16 }
  0x20   :  { %v946_v15 = vld [vmem:[#allocation2 + $0x28] sm:$0xff]   ;;  %v187_v16 = vrot.slane %v800_v7, 1  ;;  %v118_v17 = vshll.u32 %v800_v7, 16  ;;  %v1152_v19 = vld [vmem:[%s1295_s0 + $0x20] sm:$0xf]  ;;  %v116_v23 = vshrl.u32 %v800_v7, 16  ;;  %v805_v28 = vcombine.low %v1143_v13, %v70_v14 }
  0x21   :  { %197 = vrot.lane.b32.xlu1 %v188_v11, %s1039_s30  ;;  %v190_v20 = vrot.slane %v803_v8, 1  ;;  %v130_v21 = vshrl.u32 %v802_v12, 16  ;;  %v132_v22 = vshll.u32 %v802_v12, 16  ;;  %v68_v24 = vld [vmem:[%s1295_s0 + $0x24] sm:$0x1]  ;;  %870 = vmatprep.subr.bf16.mxu0 %v946_v15  ;;  %v189_v25 = vrot.slane %v802_v12, 1 }
  0x22   :  { %195 = vrot.lane.b32.xlu0 %v187_v16, %s1039_s30  ;;  %v120_v26 = vrot.slane %v118_v17, 1  ;;  %v139_v27 = vshll.u32 %v803_v8, 16  ;;  %v1163_v29 = vld [vmem:[%s1295_s0 + $0x38] sm:$0xf]  ;;  %871 = vmatpush3.bf16.msra.mxu0 %v946_v15  ;;  %v947_v30 = vld [vmem:[#allocation2 + $0x20] sm:$0xff]   ;;  %v804_v32 = vcombine.low %v1152_v19, %v68_v24  ;;  %v137_v36 = vshrl.u32 %v803_v8, 16 }
  0x23   :  { %v134_v31 = vrot.slane %v132_v22, 1  ;;  %v74_v33 = vld [vmem:[%s1295_s0 + $0x3c] sm:$0x1]  ;;  %v1172_v34 = vld [vmem:[%s1295_s0 + $0x30] sm:$0xf]  ;;  %v123_v37 = vshrl.u32 %v1115_v3, 16  ;;  %872 = vmatprep.subr.bf16.mxu0 %v947_v30 }
  0x24   :  { %v948_v35 = vld [vmem:[#allocation2 + $0x18] sm:$0xff]   ;;  %v72_v38 = vld [vmem:[%s1295_s0 + $0x34] sm:$0x1]  ;;  %v141_v40 = vrot.slane %v139_v27, 1  ;;  %v153_v41 = vshll.u32 %v805_v28, 16  ;;  %v146_v42 = vshll.u32 %v804_v32, 16  ;;  %v121_v43 = vor.u32 %v120_v26, %v116_v23 }
  0x25   :  { %201 = vrot.lane.b32.xlu1 %v190_v20, %s1039_s30  ;;  %v135_v39 = vor.u32 %v134_v31, %v130_v21  ;;  %v127_v44 = vrot.slane %v125_v18, 1  ;;  %v807_v45 = vcombine.low %v1163_v29, %v74_v33  ;;  %v806_v46 = vcombine.low %v1172_v34, %v72_v38  ;;  %v949_v48 = vld [vmem:[#allocation2 + $0x10] sm:$0xff]   ;;  %s1042_s0 = smov 32   ;;  %v950_v56 = vld [vmem:[#allocation2 + $0x8] sm:$0xff]   ;;  %v951_v63 = vld [vmem:[#allocation2] sm:$0xff]   ;;  %s1045_s21 = smov [#allocation7]  }
  0x26   :  { %199 = vrot.lane.b32.xlu0 %v189_v25, %s1039_s30  ;;  %873 = vmatpush3.bf16.msra.mxu0 %v947_v30  ;;  %v151_v47 = vshrl.u32 %v805_v28, 16  ;;  %v144_v49 = vshrl.u32 %v804_v32, 16  ;;  %v192_v52 = vrot.slane %v805_v28, 1  ;;  %v142_v53 = vor.u32 %v141_v40, %v137_v36  ;;  %s790_s6 = sshll.u32 %s1045_s21, 4  ;;  %s791_s6 = int_to_ptr.vmem [resolvable:$true] %s790_s6 }
  0x27   :  { %874 = vmatprep.subr.bf16.mxu0 %v948_v35  ;;  %v167_v50 = vshll.u32 %v807_v45, 16  ;;  %v160_v51 = vshll.u32 %v806_v46, 16  ;;  %v155_v54 = vrot.slane %v153_v41, 1  ;;  %v148_v55 = vrot.slane %v146_v42, 1  ;;  %s1012_s22 = scalar_lea.vmem %s791_s6, 128  ;;  %p1017_p11 = scmp.lt.s32.totalorder %s791_s6, %s791_s6 }
  0x28   :  { %v128_v57 = vor.u32 %v127_v44, %v123_v37  ;;  %v165_v58 = vshrl.u32 %v807_v45, 16  ;;  %v158_v59 = vshrl.u32 %v806_v46, 16  ;;  %v191_v6 = vrot.slane %v804_v32, 1  ;;  %v952_v44 = vld [vmem:[%s1299_s4 + $0x38] sm:$0xff]   ;;  %p1013_p10 = scmp.ne.s32.totalorder %s791_s6, %s1012_s22  ;;  %p1018_p12 = scmp.lt.s32.totalorder %s1012_s22, %s1012_s22 }
  0x29   :  { %175 = vrot.lane.b32.xlu1 %v135_v39, %s1042_s0  ;;  %v169_v60 = vrot.slane %v167_v50, 1  ;;  %v162_v61 = vrot.slane %v160_v51, 1  ;;  %v156_v62 = vor.u32 %v155_v54, %v151_v47  ;;  %v149_v1 = vor.u32 %v148_v55, %v144_v49  ;;  %v956_v47 = vld [vmem:[%s1299_s4 + $0x18] sm:$0xff]   ;;  %v958_v49 = vld [vmem:[%s1299_s4 + $0x8] sm:$0xff]   ;;  %v959_v50 = vld [vmem:[%s1299_s4] sm:$0xff]  }
  0x2a   :  { %171 = vrot.lane.b32.xlu0 %v121_v43, %s1042_s0  ;;  %875 = vmatpush3.bf16.msra.mxu0 %v948_v35  ;;  %v194_v7 = vrot.slane %v807_v45, 1  ;;  %v193_v8 = vrot.slane %v806_v46, 1  ;;  %vm211_vm0 = vcmask 261120   ;;  %vm236_vm1 = vcmask 523264   ;;  %v955_v46 = vld [vmem:[%s1299_s4 + $0x20] sm:$0xff]   ;;  %p1019_p13 = por %p1018_p12, %p1017_p11 }
  0x2b   :  { %876 = vmatprep.subr.bf16.mxu0 %v949_v48  ;;  %v170_v3 = vor.u32 %v169_v60, %v165_v58  ;;  %v163_v4 = vor.u32 %v162_v61, %v158_v59  ;;  %vm321_vm2 = vcmask 785408   ;;  %v1043_v45 = vmov 0.0   ;;  %v399_v51 = vld [vmem:[%s1298_s3] sm:$0xff] }
  0x2c   :  { %890 = vmatprep.subr.bf16.mxu1 %v1043_v45  ;;  %vm1044_vm3 = vmmov 0   ;;  %vm527_vm4 = vcmask 1041409   ;;  %vm530_vm5 = vcmask 1042434   ;;  %vm533_vm6 = vcmask 1043459   ;;  %p1020_p0 = pnand %p1019_p13, %p1013_p10 }
  0x2d   :  { %177 = vrot.lane.b32.xlu1 %v142_v53, %s1042_s0  ;;  %891 = vmatpush3.bf16.msra.mxu1 %v952_v44  ;;  %vm536_vm7 = vcmask 1044484   ;;  %vm539_vm8 = vcmask 1045509   ;;  %vm542_vm9 = vcmask 1046534   ;;  %vm545_vm10 = vcmask 1047559  }
  0x2e   :  { %173 = vrot.lane.b32.xlu0 %v128_v57, %s1042_s0  ;;  %877 = vmatpush3.bf16.msra.mxu0 %v949_v48  ;;  %v957_v48 = vld [vmem:[%s1299_s4 + $0x10] sm:$0xff]  }
  0x2f   :  { %878 = vmatprep.subr.bf16.mxu0 %v950_v56  ;;  %892 = vmatprep.subr.bf16.mxu1 %v1043_v45 }
  0x30   :  { %906 = vmatprep.mubr.msk.bf16.mxu1 %vm1044_vm3, %v1043_v45 }
  0x31   :  { %181 = vrot.lane.b32.xlu1 %v156_v62, %s1042_s0 }
  0x32   :  { %179 = vrot.lane.b32.xlu0 %v149_v1, %s1042_s0  ;;  %879 = vmatpush3.bf16.msra.mxu0 %v950_v56 }
  0x33   :  { %880 = vmatprep.subr.bf16.mxu0 %v951_v63 }
  0x35   :  { %185 = vrot.lane.b32.xlu1 %v170_v3, %s1042_s0 }
  0x36   :  { %183 = vrot.lane.b32.xlu0 %v163_v4, %s1042_s0  ;;  %881 = vmatpush3.bf16.msra.mxu0 %v951_v63 }
  0x37   :  { %910 = vmatprep.subr.bf16.mxu0 %v1043_v45 }
  0x39   :  { %205 = vrot.lane.b32.xlu1 %v192_v52, %s1039_s30 }
  0x3a   :  { %203 = vrot.lane.b32.xlu0 %v191_v6, %s1039_s30 }
  0x3d   :  { %209 = vrot.lane.b32.xlu1 %v194_v7, %s1039_s30 }
  0x3e   :  { %207 = vrot.lane.b32.xlu0 %v193_v8, %s1039_s30 }
  0x93   :  { %v198_v10 = vpop.permute.xlu1 %197 }
  0x94   :  { %v196_v11 = vpop.permute.xlu0 %195 }
  0x97   :  { %v202_v12 = vpop.permute.xlu1 %201 }
  0x98   :  { %v200_v14 = vpop.permute.xlu0 %199 }
  0x9b   :  { %v176_v15 = vpop.permute.xlu1 %175 }
  0x9c   :  { %v172_v16 = vpop.permute.xlu0 %171  ;;  %v220_v17 = vsel %vm211_vm0, %v1133_v9, %v176_v15 }
  0x9d   :  { %v214_v18 = vsel %vm211_vm0, %v1112_v2, %v172_v16  ;;  %v242_v23 = vsel %vm236_vm1, %v220_v17, %v200_v14 }
  0x9e   :  { %v238_v27 = vsel %vm236_vm1, %v214_v18, %v196_v11 }
  0x9f   :  { %v178_v20 = vpop.permute.xlu1 %177 }
  0xa0   :  { %v223_v21 = vsel %vm211_vm0, %v1123_v5, %v178_v20  ;;  %v174_v22 = vpop.permute.xlu0 %173 }
  0xa1   :  { %v244_v24 = vsel %vm236_vm1, %v223_v21, %v202_v12  ;;  %v217_v25 = vsel %vm211_vm0, %v1104_v0, %v174_v22 }
  0xa2   :  { %v809_v26 = vcombine.low %v242_v23, %v244_v24  ;;  %v240_v9 = vsel %vm236_vm1, %v217_v25, %v198_v10  ;;  %v1255_v23 = vld [vmem:[%s1297_s2] ss:$0 sm:$0xff] }
  0xa3   :  { %v182_v28 = vpop.permute.xlu1 %181  ;;  %v808_v2 = vcombine.low %v238_v27, %v240_v9 }
  0xa4   :  { %v180_v30 = vpop.permute.xlu0 %179  ;;  %v229_v32 = vsel %vm211_vm0, %v1143_v13, %v182_v28 }
  0xa5   :  { %882 = vmatprep.mubr.msk.bf16.mxu0 %vm321_vm2, %v808_v2  ;;  %v226_v0 = vsel %vm211_vm0, %v1152_v19, %v180_v30 }
  0xa6   :  { %883 = vmatmul.mubr.msk.bf16.vlgmr.msra.gmra.mxu0 %vm321_vm2, %v809_v26 }
  0xa7   :  { %v186_v5 = vpop.permute.xlu1 %185 }
  0xa8   :  { %v184_v31 = vpop.permute.xlu0 %183  ;;  %v235_v39 = vsel %vm211_vm0, %v1163_v29, %v186_v5  ;;  %v953_v29 = vld [vmem:[%s1299_s4 + $0x30] sm:$0xff]  }
  0xa9   :  { %v232_v41 = vsel %vm211_vm0, %v1172_v34, %v184_v31  ;;  %893 = vmatpush3.bf16.msra.mxu1 %v953_v29  ;;  %v954_v34 = vld [vmem:[%s1299_s4 + $0x28] sm:$0xff]  }
  0xaa   :  { %894 = vmatprep.subr.bf16.mxu1 %v1043_v45 }
  0xab   :  { %v206_v33 = vpop.permute.xlu1 %205 }
  0xac   :  { %v248_v35 = vsel %vm236_vm1, %v229_v32, %v206_v33  ;;  %v204_v36 = vpop.permute.xlu0 %203 }
  0xad   :  { %v246_v37 = vsel %vm236_vm1, %v226_v0, %v204_v36  ;;  %895 = vmatpush3.bf16.msra.mxu1 %v954_v34 }
  0xae   :  { %v810_v38 = vcombine.low %v246_v37, %v248_v35  ;;  %896 = vmatprep.subr.bf16.mxu1 %v1043_v45 }
  0xaf   :  { %v210_v40 = vpop.permute.xlu1 %209 }
  0xb0   :  { %v252_v42 = vsel %vm236_vm1, %v235_v39, %v210_v40  ;;  %886 = vmatprep.mubr.msk.bf16.mxu0 %vm321_vm2, %v810_v38  ;;  %v208_v13 = vpop.permute.xlu0 %207 }
  0xb1   :  { %v250_v19 = vsel %vm236_vm1, %v232_v41, %v208_v13  ;;  %897 = vmatpush3.bf16.msra.mxu1 %v955_v46 }
  0xb2   :  { %v811_v43 = vcombine.low %v250_v19, %v252_v42  ;;  %898 = vmatprep.subr.bf16.mxu1 %v1043_v45 }
  0xb4   :  { %887 = vmatmul.mubr.msk.bf16.gmra.mxu0 %vm321_vm2, %v811_v43 }
  0xb5   :  { %899 = vmatpush3.bf16.msra.mxu1 %v956_v47  ;;  %926 = vmatprep.mubr.msk.bf16.mxu0 %vm1044_vm3, %v1043_v45 }
  0xb6   :  { %900 = vmatprep.subr.bf16.mxu1 %v1043_v45 }
  0xb9   :  { %901 = vmatpush3.bf16.msra.mxu1 %v957_v48 }
  0xba   :  { %902 = vmatprep.subr.bf16.mxu1 %v1043_v45 }
  0xbd   :  { %903 = vmatpush3.bf16.msra.mxu1 %v958_v49 }
  0xbe   :  { %904 = vmatprep.subr.bf16.mxu1 %v1043_v45 }
  0xc1   :  { %905 = vmatpush3.bf16.msra.mxu1 %v959_v50 }
 0x166   :  { %v884_v52 = vpop.f32.mrf.mxu0 }
 0x167   :  { %v402_v53 = vadd.f32 %v884_v52, %v399_v51 }
 0x168   :  { %v368_v54 = vpop.f32.mrf.mxu0 }
 0x169   :  { %v420_v55 = vrot.slane %v402_v53, 4  ;;  %v400_v56 = vadd.f32 %v399_v51, %v368_v54 }
 0x16a   :  { %v885_v57 = vpop.f32.mrf.mxu0 }
 0x16b   :  { %v421_v58 = vmax.f32 %v402_v53, %v420_v55  ;;  %v408_v59 = vrot.slane %v400_v56, 4  ;;  %v403_v60 = vadd.f32 %v885_v57, %v399_v51 }
 0x16c   :  { %v371_v61 = vpop.f32.mrf.mxu0 }
 0x16d   :  { %v422_v62 = vrot.slane %v421_v58, 2  ;;  %v409_v63 = vmax.f32 %v400_v56, %v408_v59  ;;  %v426_v1 = vrot.slane %v403_v60, 4  ;;  %v401_v3 = vadd.f32 %v399_v51, %v371_v61 }
 0x16f   :  { %v423_v4 = vmax.f32 %v421_v58, %v422_v62  ;;  %v410_v6 = vrot.slane %v409_v63, 2  ;;  %v427_v7 = vmax.f32 %v403_v60, %v426_v1  ;;  %v414_v8 = vrot.slane %v401_v3, 4 }
 0x171   :  { %v424_v10 = vrot.slane %v423_v4, 1  ;;  %v411_v11 = vmax.f32 %v409_v63, %v410_v6  ;;  %v428_v12 = vrot.slane %v427_v7, 2  ;;  %v415_v14 = vmax.f32 %v401_v3, %v414_v8 }
 0x173   :  { %v412_v15 = vrot.slane %v411_v11, 1  ;;  %v429_v16 = vmax.f32 %v427_v7, %v428_v12  ;;  %v416_v17 = vrot.slane %v415_v14, 2  ;;  %v425_v20 = vmax.f32 %v423_v4, %v424_v10 }
 0x174   :  { %v888_v18 = vpop.f32.mrf.mxu0 }
 0x175   :  { %v430_v21 = vrot.slane %v429_v16, 1  ;;  %v417_v22 = vmax.f32 %v415_v14, %v416_v17  ;;  %v406_v24 = vadd.f32 %v888_v18, %v399_v51  ;;  %v413_v26 = vmax.f32 %v411_v11, %v412_v15 }
 0x176   :  { %v384_v25 = vpop.f32.mrf.mxu0  ;;  %v465_v5 = vadd.f32 %v1255_v23, %v425_v20 }
 0x177   :  { %v431_v27 = vmax.f32 %v429_v16, %v430_v21  ;;  %v418_v9 = vrot.slane %v417_v22, 1  ;;  %v444_v28 = vrot.slane %v406_v24, 4  ;;  %v404_v2 = vadd.f32 %v399_v51, %v384_v25 }
 0x178   :  { %v889_v30 = vpop.f32.mrf.mxu0  ;;  %v463_v37 = vadd.f32 %v1255_v23, %v413_v26  ;;  %v473_v13 = vmax.f32 %v465_v5, 0.0 }
 0x179   :  { %v466_v31 = vadd.f32 %v1255_v23, %v431_v27  ;;  %v419_v32 = vmax.f32 %v417_v22, %v418_v9  ;;  %v445_v33 = vmax.f32 %v406_v24, %v444_v28  ;;  %v432_v0 = vrot.slane %v404_v2, 4 }
 0x17a   :  { %v407_v35 = vadd.f32 %v889_v30, %v399_v51  ;;  %v387_v36 = vpop.f32.mrf.mxu0  ;;  %v471_v47 = vmax.f32 %v463_v37, 0.0  ;;  %v481_v7 = vpack.c.bf16 %v473_v13, %v473_v13 }
 0x17b   :  { %v405_v38 = vadd.f32 %v399_v51, %v387_v36  ;;  %v464_v39 = vadd.f32 %v1255_v23, %v419_v32  ;;  %v446_v40 = vrot.slane %v445_v33, 2  ;;  %v433_v41 = vmax.f32 %v404_v2, %v432_v0 }
 0x17c   :  { %v450_v42 = vrot.slane %v407_v35, 4  ;;  %v474_v19 = vmax.f32 %v466_v31, 0.0  ;;  %v656_v51 = vrot.slane %v473_v13, 6  ;;  %v479_v10 = vpack.c.bf16 %v471_v47, %v471_v47 }
 0x17d   :  { %v472_v43 = vmax.f32 %v464_v39, 0.0  ;;  %v447_v44 = vmax.f32 %v445_v33, %v446_v40  ;;  %v434_v29 = vrot.slane %v433_v41, 2  ;;  %v438_v46 = vrot.slane %v405_v38, 4 }
 0x17e   :  { %v451_v34 = vmax.f32 %v407_v35, %v450_v42  ;;  %v658_v55 = vrot.slane %v474_v19, 5  ;;  %v482_v11 = vpack.c.bf16 %v474_v19, %v474_v19  ;;  %v520_v21 = vunpack.c.l.b16 %v481_v7 }
 0x17f   :  { %v654_v48 = vrot.slane %v472_v43, 7  ;;  %v448_v49 = vrot.slane %v447_v44, 1  ;;  %v435_v50 = vmax.f32 %v433_v41, %v434_v29  ;;  %v480_v52 = vpack.c.bf16 %v472_v43, %v472_v43 }
 0x180   :  { %v452_v53 = vrot.slane %v451_v34, 2  ;;  %v439_v54 = vmax.f32 %v405_v38, %v438_v46  ;;  %v518_v25 = vunpack.c.l.b16 %v479_v10  ;;  %v521_v26 = vunpack.c.l.b16 %v482_v11 }
 0x181   :  { %v655_v56 = vsel %vm527_vm4, %v654_v48, %v471_v47  ;;  %v449_v57 = vmax.f32 %v447_v44, %v448_v49  ;;  %v436_v58 = vrot.slane %v435_v50, 1  ;;  %v519_v3 = vunpack.c.l.b16 %v480_v52  ;;  %v960_v52 = vld [vmem:[#allocation5 + $0x38] sm:$0xff]  }
 0x182   :  { %v657_v59 = vsel %vm530_vm5, %v656_v51, %v655_v56  ;;  %v453_v60 = vmax.f32 %v451_v34, %v452_v53  ;;  %v440_v61 = vrot.slane %v439_v54, 2  ;;  %v529_v33 = vrot.slane %v520_v21, 6  ;;  %911 = vmatpush3.bf16.msra.mxu0 %v960_v52  ;;  %v961_v53 = vld [vmem:[#allocation5 + $0x30] sm:$0xff]   ;;  %v964_v56 = vld [vmem:[#allocation5 + $0x18] sm:$0xff]  }
 0x183   :  { %v469_v62 = vadd.f32 %v1255_v23, %v449_v57  ;;  %v437_v63 = vmax.f32 %v435_v50, %v436_v58  ;;  %v659_v1 = vsel %vm533_vm6, %v658_v55, %v657_v59  ;;  %v526_v17 = vrot.slane %v519_v3, 7  ;;  %912 = vmatprep.subr.bf16.mxu0 %v1043_v45  ;;  %v963_v55 = vld [vmem:[#allocation5 + $0x20] sm:$0xff]   ;;  %v965_v57 = vld [vmem:[#allocation5 + $0x10] sm:$0xff]   ;;  %v966_v58 = vld [vmem:[#allocation5 + $0x8] sm:$0xff]  }
 0x184   :  { %v454_v4 = vrot.slane %v453_v60, 1  ;;  %v441_v6 = vmax.f32 %v439_v54, %v440_v61  ;;  %v532_v0 = vrot.slane %v521_v26, 5  ;;  %v962_v54 = vld [vmem:[#allocation5 + $0x28] sm:$0xff]   ;;  %v967_v59 = vld [vmem:[#allocation5] sm:$0xff]  }
 0x185   :  { %v467_v8 = vadd.f32 %v1255_v23, %v437_v63  ;;  %v477_v15 = vmax.f32 %v469_v62, 0.0  ;;  %v528_v5 = vsel %vm527_vm4, %v526_v17, %v518_v25 }
 0x186   :  { %v455_v12 = vmax.f32 %v453_v60, %v454_v4  ;;  %v442_v14 = vrot.slane %v441_v6, 1  ;;  %913 = vmatpush3.bf16.msra.mxu0 %v961_v53  ;;  %v823_v60 = vld [vmem:[%s1300_s5] ss:$0 sm:$0xff] }
 0x187   :  { %v475_v16 = vmax.f32 %v467_v8, 0.0  ;;  %v485_v28 = vpack.c.bf16 %v477_v15, %v477_v15  ;;  %v664_v37 = vrot.slane %v477_v15, 2  ;;  %914 = vmatprep.subr.bf16.mxu0 %v1043_v45 }
 0x188   :  { %v470_v18 = vadd.f32 %v1255_v23, %v455_v12  ;;  %v443_v20 = vmax.f32 %v441_v6, %v442_v14 }
 0x189   :  { %v483_v22 = vpack.c.bf16 %v475_v16, %v475_v16  ;;  %v660_v24 = vrot.slane %v475_v16, 4  ;;  %v524_v39 = vunpack.c.l.b16 %v485_v28  ;;  %v833_v16 = vld [vmem:[%s1302_s7] ss:$0 sm:$0xff] }
 0x18a   :  { %v478_v27 = vmax.f32 %v470_v18, 0.0  ;;  %v468_v9 = vadd.f32 %v1255_v23, %v443_v20  ;;  %v531_v23 = vsel %vm530_vm5, %v529_v33, %v528_v5  ;;  %915 = vmatpush3.bf16.msra.mxu0 %v962_v54 }
 0x18b   :  { %v522_v2 = vunpack.c.l.b16 %v483_v22  ;;  %v661_v30 = vsel %vm536_vm7, %v660_v24, %v659_v1  ;;  %v534_v44 = vsel %vm533_vm6, %v532_v0, %v531_v23  ;;  %v541_v46 = vrot.slane %v524_v39, 2  ;;  %916 = vmatprep.subr.bf16.mxu0 %v1043_v45 }
 0x18c   :  { %v476_v31 = vmax.f32 %v468_v9, 0.0  ;;  %v486_v32 = vpack.c.bf16 %v478_v27, %v478_v27  ;;  %v666_v40 = vrot.slane %v478_v27, 1 }
 0x18d   :  { %v535_v38 = vrot.slane %v522_v2, 4 }
 0x18e   :  { %v484_v35 = vpack.c.bf16 %v476_v31, %v476_v31  ;;  %v662_v36 = vrot.slane %v476_v31, 3  ;;  %v525_v42 = vunpack.c.l.b16 %v486_v32  ;;  %917 = vmatpush3.bf16.msra.mxu0 %v963_v55 }
 0x18f   :  { %v537_v34 = vsel %vm536_vm7, %v535_v38, %v534_v44  ;;  %918 = vmatprep.subr.bf16.mxu0 %v1043_v45 }
 0x190   :  { %v523_v41 = vunpack.c.l.b16 %v484_v35  ;;  %v663_v13 = vsel %vm539_vm8, %v662_v36, %v661_v30  ;;  %v544_v48 = vrot.slane %v525_v42, 1 }
 0x191   :  { %v665_v19 = vsel %vm542_vm9, %v664_v37, %v663_v13 }
 0x192   :  { %v538_v43 = vrot.slane %v523_v41, 3  ;;  %v667_v29 = vsel %vm545_vm10, %v666_v40, %v665_v19  ;;  %919 = vmatpush3.bf16.msra.mxu0 %v964_v56 }
 0x193   :  { %920 = vmatprep.subr.bf16.mxu0 %v1043_v45 }
 0x194   :  { %v540_v47 = vsel %vm539_vm8, %v538_v43, %v537_v34 }
 0x195   :  { %v543_v49 = vsel %vm542_vm9, %v541_v46, %v540_v47 }
 0x196   :  { %v546_v50 = vsel %vm545_vm10, %v544_v48, %v543_v49  ;;  %921 = vmatpush3.bf16.msra.mxu0 %v965_v57 }
 0x197   :  { %v547_v51 = vpack.c.b16 %v546_v50, %v546_v50  ;;  %922 = vmatprep.subr.bf16.mxu0 %v1043_v45 }
 0x199   :  { %907 = vmatmul.mubr.bf16.vlgmr.msra.gmra.mxu1 %v547_v51 }
 0x19a   :  { %923 = vmatpush3.bf16.msra.mxu0 %v966_v58 }
 0x19b   :  { %924 = vmatprep.subr.bf16.mxu0 %v1043_v45 }
 0x19e   :  { %925 = vmatpush3.bf16.msra.mxu0 %v967_v59 }
 0x259   :  { %v631_v61 = vpop.f32.mrf.mxu1 }
 0x25a   :  { %v632_v62 = vadd.f32 %v823_v60, %v631_v61 }
 0x25b   :  { %v908_v63 = vpop.f32.mrf.mxu1 }
 0x25c   :  { %v832_v1 = vmul.f32 -1.442695, %v632_v62  ;;  %v643_v10 = vmax.f32 %v632_v62, 0.0 }
 0x25d   :  { %v634_v3 = vpop.f32.mrf.mxu1 }
 0x25e   :  { %968 = vpow2.f32 %v832_v1 }
 0x25f   :  { %v909_v4 = vpop.f32.mrf.mxu1 }
 0x26b   :  { %v969_v6 = vpop.eup %968 }
 0x26c   :  { %v640_v7 = vadd.f32 1.0, %v969_v6 }
 0x26e   :  { %970 = vrcp.f32 %v640_v7 }
 0x27b   :  { %v971_v8 = vpop.eup %970 }
 0x27c   :  { %v645_v11 = vsub.f32 1.0, %v971_v8  ;;  %v644_v45 = vmul.f32 %v971_v8, %v643_v10 }
 0x27e   :  { %v669_v12 = vmul.f32 %v667_v29, %v645_v11 }
 0x280   :  { %v670_v14 = vadd.f32 %v669_v12, %v644_v45 }
 0x282   :  { %v671_v15 = vpack.c.bf16 %v670_v14, %v670_v14 }
 0x284   :  { %927 = vmatmul.mubr.bf16.vlgmr.msra.gmra.mxu0 %v671_v15 }
 0x344   :  { %v777_v17 = vpop.f32.mrf.mxu0 }
 0x345   :  { %v778_v18 = vadd.f32 %v833_v16, %v777_v17 }
 0x346   :  { %v928_v20 = vpop.f32.mrf.mxu0 }
 0x347   :  { %783 = vst [vmem:[#allocation7] sm:$0xff] %v778_v18 }
 0x348   :  { %v780_v21 = vpop.f32.mrf.mxu0 }
 0x349   :  { %1023 = shalt.err (!%p1020_p0)
}
 0x34a   :  { %793 = dma.vmem_to_hbm [thread:$0]  %s791_s6, 128, %s1303_s8, [#allocation4]   ;;  %v929_v22 = vpop.f32.mrf.mxu0 }
 0x34b   :  { %1036 = dma.done.wait [#allocation4], 128  }
 0x34c   :  { %1037 = vsyncadd [#allocation4], 4294967168 }
 0x34d   :  { %797 = vsyncpa [#allocation3], 1 }
 0x34e   :  { %798 = vsyncpa [#allocation6], 1 }
 0x34f   :  { %799 = vsyncpa [#allocation4], 1 }

</bundles_post_ra>
